<compile_context>
chip_gen: v7x
topology: tpu7x:2x2x1
jax: 0.10.0
libtpu: 0.0.40
codegen_flags: <defaults>
</compile_context>

<pallas_src>
import functools

import jax
import jax.numpy as jnp
from jax import lax
from jax.experimental import pallas as pl
from jax.experimental.pallas import tpu as pltpu
import numpy as np


def _cdiv(a, b):
    return -(-a // b)


def _round_up(a, b):
    return _cdiv(a, b) * b


def _vmem_budget_bytes():
    """Per-generation VMEM budget (used both as Mosaic limit and for tile sizing)."""
    kind = ""
    try:
        kind = jax.devices()[0].device_kind.lower()
    except Exception:
        pass
    if ("v5" in kind) or ("v6" in kind):
        return 100 * 1024 * 1024      # 128 MiB physical VMEM -> big tiles
    if ("v7" in kind) or ("7x" in kind):
        return 56 * 1024 * 1024       # 64 MiB physical VMEM on v7x
    return 48 * 1024 * 1024           # unknown chip: conservative


def _pick_row_tile(tm_req, M, K, Ep, Pp, out_bytes, budget, single_buffer_weights):
    """Row-tile size tm (and padded row count Mp) that fits the VMEM budget."""
    w_bufs = 1 if single_buffer_weights else 2
    fixed = w_bufs * (K * Ep * 2 + 8 * Ep * 4)             # resident weight + bias
    per_row = (2 * K * 2                                   # x tile (bf16, double-buffered)
               + 2 * Pp * 2                                # mask tile (bf16, double-buffered)
               + 2 * Ep * out_bytes                        # embedding tile
               + 2 * 8 * 4)                                # (1, tm) i32 flags (8-sublane pad)
    avail = int(budget * 0.85) - fixed
    cap = 128
    if avail > per_row * 128:
        cap = (avail // per_row) // 128 * 128
    # TODO(synk): for extreme K*E where the resident weight alone crowds the budget,
    # add a trailing "arbitrary" K grid axis + f32 accumulator scratch instead of
    # only shrinking tm.
    if tm_req is None:
        tm_req = 1024 if budget >= 96 * 1024 * 1024 else 512
    if M <= 256:
        tm = _round_up(M, 8)             # single tile covers every patch row
        return tm, tm
    tm = min(_round_up(min(tm_req, cap), 128), cap)
    ntiles = max(2, _cdiv(M, tm))         # >= 2 tiles so both v7x TCs get work
    tm = min(_round_up(_cdiv(M, ntiles), 128), cap)
    ntiles = max(2, _cdiv(M, tm))
    return tm, ntiles * tm


def _embed_kernel(x_ref, w_ref, b_ref, o_ref):
    # x_ref: [tm, K] bf16, w_ref: [K, Ep] bf16, b_ref: [1, Ep] f32, o_ref: [tm, Ep]
    acc = jnp.dot(x_ref[...], w_ref[...], preferred_element_type=jnp.float32)
    o_ref[...] = (acc + b_ref[...]).astype(o_ref.dtype)


def _embed_mask_kernel(x_ref, w_ref, b_ref, m_ref, o_ref, mo_ref, *, half_p):
    # m_ref : [Pp, tm] bf16 mask pixels (patch pixel on sublane, patch id on lane)
    # mo_ref: [1,  tm] i32  mask-patch flags (lane-dense store)
    acc = jnp.dot(x_ref[...], w_ref[...], preferred_element_type=jnp.float32)
    o_ref[...] = (acc + b_ref[...]).astype(o_ref.dtype)
    s = jnp.sum(m_ref[...].astype(jnp.float32), axis=0, keepdims=True)   # [1, tm]
    mo_ref[...] = (s > half_p).astype(jnp.int32)     # sum > 0.5*P  <=>  mean > 0.5


@functools.partial(
    jax.jit,
    static_argnames=("patch_size", "tm", "out_dtype", "input_fusion",
                     "single_buffer_weights"))
def masked_patch_embed_3d(x, weight, bias, mask=None, *, patch_size,
                          tm=None, out_dtype=jnp.bfloat16,
                          input_fusion=True, single_buffer_weights=True):
    """x: [B,C,D,H,W] f32, weight: [E,C,pd,ph,pw] f32, bias: [E] f32,
    mask: [B,1,D,H,W] (float/bool) or None.  Returns (x_embed [B,N,E], mask [B,N]|None)."""
    pd_, ph_, pw_ = patch_size
    B, C, D, H, W = x.shape
    E = weight.shape[0]
    have_mask = mask is not None

    # _pad_if_needed (zero pad at the end of each spatial dim).
    padD, padH, padW = (-D) % pd_, (-H) % ph_, (-W) % pw_
    Dp, Hp, Wp = (D + padD) // pd_, (H + padH) // ph_, (W + padW) // pw_
    N = Dp * Hp * Wp
    M = B * N
    K = C * pd_ * ph_ * pw_
    P = pd_ * ph_ * pw_

    # Lane-pad E only when the relative padding is small (E > 128); small-E configs
    # keep the unpadded (fewer HBM bytes) stream, offset by the bf16 output store.
    Ep = _round_up(E, 128) if E > 128 else E
    Pp = _round_up(P, 16) if have_mask else 0           # bf16 sublane packing
    out_bytes = np.dtype(out_dtype).itemsize

    budget = _vmem_budget_bytes()
    tm_eff, Mp = _pick_row_tile(tm, M, K, Ep, Pp, out_bytes, budget,
                                single_buffer_weights)

    # ---- patch matrix [Mp, K] bf16 (producer may fuse into the kernel operand) ----
    xb = jnp.pad(x.astype(jnp.bfloat16),
                 ((0, 0), (0, 0), (0, padD), (0, padH), (0, padW)))
    xp = xb.reshape(B, C, Dp, pd_, Hp, ph_, Wp, pw_)
    xp = xp.transpose(0, 2, 4, 6, 1, 3, 5, 7).reshape(M, K)  # rows (b,d,h,w), cols (C,pd,ph,pw)
    if Mp > M:
        xp = jnp.pad(xp, ((0, Mp - M), (0, 0)))

    # ---- projection weight [K, Ep] bf16 + bias [1, Ep] f32 (resident) ----
    w2 = weight.reshape(E, K).T.astype(jnp.bfloat16)
    b2 = bias.astype(jnp.float32).reshape(1, E)
    if Ep > E:
        w2 = jnp.pad(w2, ((0, 0), (0, Ep - E)))
        b2 = jnp.pad(b2, ((0, 0), (0, Ep - E)))

    x_spec = pl.BlockSpec((tm_eff, K), lambda i: (i, 0))
    if single_buffer_weights:
        w_spec = pl.BlockSpec((K, Ep), lambda i: (0, 0), pipeline_mode=pl.Buffered(1))
        b_spec = pl.BlockSpec((1, Ep), lambda i: (0, 0), pipeline_mode=pl.Buffered(1))
    else:
        w_spec = pl.BlockSpec((K, Ep), lambda i: (0, 0))
        b_spec = pl.BlockSpec((1, Ep), lambda i: (0, 0))
    o_spec = pl.BlockSpec((tm_eff, Ep), lambda i: (i, 0))

    if have_mask:
        # Mask pixels in [P, M] layout so the sublane reduction lands in a
        # lane-dense (1, tm) store.  bf16 is exact for 0/1 masks.
        mb = jnp.pad(mask.astype(jnp.bfloat16),
                     ((0, 0), (0, 0), (0, padD), (0, padH), (0, padW)))
        mp_ = mb.reshape(B, 1, Dp, pd_, Hp, ph_, Wp, pw_)
        mp_ = mp_.transpose(1, 3, 5, 7, 0, 2, 4, 6).reshape(P, M)
        mp_ = jnp.pad(mp_, ((0, Pp - P), (0, Mp - M)))

        kernel = functools.partial(_embed_mask_kernel, half_p=0.5 * float(P))
        in_specs = [x_spec, w_spec, b_spec,
                    pl.BlockSpec((Pp, tm_eff), lambda i: (0, i))]
        out_shape = (jax.ShapeDtypeStruct((Mp, Ep), out_dtype),
                     jax.ShapeDtypeStruct((1, Mp), jnp.int32))
        out_specs = [o_spec, pl.BlockSpec((1, tm_eff), lambda i: (0, i))]
        args = (xp, w2, b2, mp_)
    else:
        kernel = _embed_kernel
        in_specs = [x_spec, w_spec, b_spec]
        out_shape = jax.ShapeDtypeStruct((Mp, Ep), out_dtype)
        out_specs = o_spec
        args = (xp, w2, b2)

    cp_kwargs = dict(dimension_semantics=("parallel",), vmem_limit_bytes=budget)
    if input_fusion:
        fusion = [False] * len(args)
        fusion[0] = True                     # let the patchify producer fuse into xp
        cp_kwargs["allow_input_fusion"] = fusion

    outs = pl.pallas_call(
        kernel,
        out_shape=out_shape,
        grid_spec=pltpu.PrefetchScalarGridSpec(
            num_scalar_prefetch=0,
            grid=(Mp // tm_eff,),
            in_specs=in_specs,
            out_specs=out_specs),
        compiler_params=pltpu.CompilerParams(**cp_kwargs),
    )(*args)

    if have_mask:
        embed, mask_out = outs
    else:
        embed = outs
    x_embed = embed[:M, :E].reshape(B, N, E)
    if not have_mask:
        return x_embed, None
    mask_patches = mask_out[0, :M].reshape(B, N) > 0
    return x_embed, mask_patches


def _call(x, weight, bias, mask, patch_size, tm):
    try:
        out = masked_patch_embed_3d(x, weight, bias, mask,
                                    patch_size=patch_size, tm=tm)
        jax.block_until_ready(out)
        return out
    except Exception:
        # Conservative fallback if input fusion / single-buffered resident operands
        # are not supported by the installed toolchain.
        out = masked_patch_embed_3d(x, weight, bias, mask,
                                    patch_size=patch_size, tm=tm,
                                    input_fusion=False,
                                    single_buffer_weights=False)
        jax.block_until_ready(out)
        return out


def _reference(x, weight, bias, mask, patch_size):
    """Pure-JAX reference matching the PyTorch forward (for validation)."""
    pd_, ph_, pw_ = patch_size
    B, C, D, H, W = x.shape
    padD, padH, padW = (-D) % pd_, (-H) % ph_, (-W) % pw_
    xp = jnp.pad(x, ((0, 0), (0, 0), (0, padD), (0, padH), (0, padW)))
    mp = jnp.pad(mask.astype(jnp.float32),
                 ((0, 0), (0, 0), (0, padD), (0, padH), (0, padW)))
    y = lax.conv_general_dilated(
        xp, weight, window_strides=patch_size, padding="VALID",
        dimension_numbers=("NCDHW", "OIDHW", "NCDHW"),
        precision=lax.Precision.HIGHEST)
    y = y + bias.reshape(1, -1, 1, 1, 1)
    Bq, E, Dq, Hq, Wq = y.shape
    x_embed = y.reshape(Bq, E, Dq * Hq * Wq).transpose(0, 2, 1)
    pooled = lax.reduce_window(
        mp, 0.0, lax.add, (1, 1, pd_, ph_, pw_), (1, 1, pd_, ph_, pw_),
        "VALID") / (pd_ * ph_ * pw_)
    mask_patches = (pooled > 0.5).squeeze(1).reshape(Bq, -1)
    return x_embed, mask_patches


def _run_case(B, C, D, H, W, patch_size, embed_dim, tm, key, use_mask=True):
    kx, km, kw, kb = jax.random.split(key, 4)
    x = jax.random.normal(kx, (B, C, D, H, W), dtype=jnp.float32)
    mask = (jax.random.uniform(km, (B, 1, D, H, W)) > 0.4).astype(jnp.float32)
    weight = jax.random.normal(
        kw, (embed_dim, C) + patch_size, dtype=jnp.float32) * 0.05
    bias = jax.random.normal(kb, (embed_dim,), dtype=jnp.float32) * 0.05

    x_embed, mask_patches = _call(x, weight, bias, mask if use_mask else None,
                                  patch_size, tm)

    ref_embed, ref_mask = _reference(x, weight, bias, mask, patch_size)
    # bf16 operands/output with f32 accumulation -> loosened tolerance vs f32 ref.
    np.testing.assert_allclose(np.asarray(x_embed, dtype=np.float32),
                               np.asarray(ref_embed), rtol=5e-2, atol=5e-2)
    if use_mask:
        np.testing.assert_array_equal(np.asarray(mask_patches),
                                      np.asarray(ref_mask))
    else:
        assert mask_patches is None


if __name__ == "__main__":
    key = jax.random.PRNGKey(0)
    k1, k2, k3 = jax.random.split(key, 3)

    # Case 1: pad-if-needed path (7 -> 8), small E kept unpadded, single-tile grid.
    _run_case(B=2, C=2, D=7, H=7, W=7, patch_size=(4, 4, 4), embed_dim=32,
              tm=512, key=k1)

    # Case 2: multi-tile grid (M = 1024, tm = 128), small K/E left unpadded in HBM,
    # lane-dense mask flags, >= 2 tiles so both v7x TensorCores get work.
    _run_case(B=2, C=3, D=16, H=16, W=16, patch_size=(2, 2, 2), embed_dim=48,
              tm=128, key=k2)

    # Case 3: mask=None specialization (no mask input/output compiled at all).
    _run_case(B=2, C=1, D=8, H=8, W=8, patch_size=(4, 4, 4), embed_dim=64,
              tm=None, key=k3, use_mask=False)

    print("KERNEL_OK")
</pallas_src>

<mosaic_0001>
module attributes {stable_mosaic.version = 11 : i64} {
  func.func @_embed_mask_kernel(%arg0: i32, %arg1: memref<16x128xbf16, #tpu.memory_space<vmem>>, %arg2: memref<128x32xbf16, #tpu.memory_space<vmem>>, %arg3: memref<1x32xf32, #tpu.memory_space<vmem>>, %arg4: memref<64x16xbf16, #tpu.memory_space<vmem>>, %arg5: memref<16x32xbf16, #tpu.memory_space<vmem>>, %arg6: memref<1x16xi32, #tpu.memory_space<vmem>>) attributes {dimension_semantics = [#tpu.dimension_semantics<parallel>], iteration_bounds = array<i64: 1>, scalar_prefetch = 0 : i64, scratch_operands = 0 : i64, tpu.core_type = #tpu.core_type<tc>, window_params = [{transform_indices = @transform_0, window_bounds = array<i64: 16, 128>}, {pipeline_mode = #tpu.pipeline_mode<synchronous>, transform_indices = @transform_1, window_bounds = array<i64: 128, 32>}, {pipeline_mode = #tpu.pipeline_mode<synchronous>, transform_indices = @transform_2, window_bounds = array<i64: 1, 32>}, {transform_indices = @transform_3, window_bounds = array<i64: 64, 16>}, {transform_indices = @transform_4, window_bounds = array<i64: 16, 32>}, {transform_indices = @transform_5, window_bounds = array<i64: 1, 16>}]} {
    %c0 = arith.constant 0 : index
    %c0_0 = arith.constant 0 : index
    %0 = vector.load %arg1[%c0, %c0_0] : memref<16x128xbf16, #tpu.memory_space<vmem>>, vector<16x128xbf16>
    %c0_1 = arith.constant 0 : index
    %c0_2 = arith.constant 0 : index
    %1 = vector.load %arg2[%c0_1, %c0_2] : memref<128x32xbf16, #tpu.memory_space<vmem>>, vector<128x32xbf16>
    %cst = arith.constant dense<0.000000e+00> : vector<16x32xf32>
    %2 = tpu.matmul %0, %1, %cst {dimension_numbers = #tpu.dot_dimension_numbers<[1], [0], [0], [1], [0, 0, 1, 1], [], []>} : vector<16x128xbf16>, vector<128x32xbf16>, vector<16x32xf32> -> vector<16x32xf32>
    %c0_3 = arith.constant 0 : index
    %c0_4 = arith.constant 0 : index
    %3 = vector.load %arg3[%c0_3, %c0_4] : memref<1x32xf32, #tpu.memory_space<vmem>>, vector<1x32xf32>
    %4 = vector.broadcast %3 : vector<1x32xf32> to vector<16x32xf32>
    %5 = arith.addf %2, %4 : vector<16x32xf32>
    %6 = arith.truncf %5 : vector<16x32xf32> to vector<16x32xbf16>
    %c0_5 = arith.constant 0 : index
    %c0_6 = arith.constant 0 : index
    %7 = vector.load %arg5[%c0_5, %c0_6] : memref<16x32xbf16, #tpu.memory_space<vmem>>, vector<16x32xbf16>
    tpu.vector_store %arg5[%c0_5, %c0_6], %6 {strides = array<i32>} : memref<16x32xbf16, #tpu.memory_space<vmem>>, vector<16x32xbf16>,
    %c0_7 = arith.constant 0 : index
    %c0_8 = arith.constant 0 : index
    %8 = vector.load %arg4[%c0_7, %c0_8] : memref<64x16xbf16, #tpu.memory_space<vmem>>, vector<64x16xbf16>
    %9 = arith.extf %8 : vector<64x16xbf16> to vector<64x16xf32>
    %cst_9 = arith.constant dense<0.000000e+00> : vector<16xf32>
    %10 = vector.multi_reduction <add>, %9, %cst_9 [0] : vector<64x16xf32> to vector<16xf32>
    %11 = vector.shape_cast %10 : vector<16xf32> to vector<1x16xf32>
    %cst_10 = arith.constant 3.200000e+01 : f32
    %12 = vector.broadcast %cst_10 : f32 to vector<1x16xf32>
    %13 = arith.cmpf ogt, %11, %12 : vector<1x16xf32>
    %14 = arith.extui %13 : vector<1x16xi1> to vector<1x16xi32>
    %c0_11 = arith.constant 0 : index
    %c0_12 = arith.constant 0 : index
    %15 = vector.load %arg6[%c0_11, %c0_12] : memref<1x16xi32, #tpu.memory_space<vmem>>, vector<1x16xi32>
    tpu.vector_store %arg6[%c0_11, %c0_12], %14 {strides = array<i32>} : memref<1x16xi32, #tpu.memory_space<vmem>>, vector<1x16xi32>,
    return
  }
  func.func @transform_0(%arg0: i32) -> (i32, i32) {
    %c0_i32 = arith.constant 0 : i32
    %c0_i32_0 = arith.constant 0 : i32
    return %arg0, %c0_i32 : i32, i32
  }
  func.func @transform_1(%arg0: i32) -> (i32, i32) {
    %c0_i32 = arith.constant 0 : i32
    %c0_i32_0 = arith.constant 0 : i32
    %c0_i32_1 = arith.constant 0 : i32
    return %c0_i32, %c0_i32_0 : i32, i32
  }
  func.func @transform_2(%arg0: i32) -> (i32, i32) {
    %c0_i32 = arith.constant 0 : i32
    %c0_i32_0 = arith.constant 0 : i32
    %c0_i32_1 = arith.constant 0 : i32
    return %c0_i32, %c0_i32_0 : i32, i32
  }
  func.func @transform_3(%arg0: i32) -> (i32, i32) {
    %c0_i32 = arith.constant 0 : i32
    %c0_i32_0 = arith.constant 0 : i32
    return %c0_i32, %arg0 : i32, i32
  }
  func.func @transform_4(%arg0: i32) -> (i32, i32) {
    %c0_i32 = arith.constant 0 : i32
    %c0_i32_0 = arith.constant 0 : i32
    return %arg0, %c0_i32 : i32, i32
  }
  func.func @transform_5(%arg0: i32) -> (i32, i32) {
    %c0_i32 = arith.constant 0 : i32
    %c0_i32_0 = arith.constant 0 : i32
    return %c0_i32, %arg0 : i32, i32
  }
}

module attributes {stable_mosaic.version = 11 : i64} {
  func.func @_embed_mask_kernel(%arg0: i32, %arg1: memref<16x128xbf16, #tpu.memory_space<vmem>>, %arg2: memref<128x32xbf16, #tpu.memory_space<vmem>>, %arg3: memref<1x32xf32, #tpu.memory_space<vmem>>, %arg4: memref<64x16xbf16, #tpu.memory_space<vmem>>, %arg5: memref<16x32xbf16, #tpu.memory_space<vmem>>, %arg6: memref<1x16xi32, #tpu.memory_space<vmem>>) attributes {dimension_semantics = [#tpu.dimension_semantics<parallel>], iteration_bounds = array<i64: 1>, scalar_prefetch = 0 : i64, scratch_operands = 0 : i64, tpu.core_type = #tpu.core_type<tc>, window_params = [{transform_indices = @transform_0, window_bounds = array<i64: 16, 128>}, {pipeline_mode = #tpu.pipeline_mode<synchronous>, transform_indices = @transform_1, window_bounds = array<i64: 128, 32>}, {pipeline_mode = #tpu.pipeline_mode<synchronous>, transform_indices = @transform_2, window_bounds = array<i64: 1, 32>}, {transform_indices = @transform_3, window_bounds = array<i64: 64, 16>}, {transform_indices = @transform_4, window_bounds = array<i64: 16, 32>}, {transform_indices = @transform_5, window_bounds = array<i64: 1, 16>}]} {
    %c0 = arith.constant 0 : index
    %c0_0 = arith.constant 0 : index
    %0 = vector.load %arg1[%c0, %c0_0] : memref<16x128xbf16, #tpu.memory_space<vmem>>, vector<16x128xbf16>
    %c0_1 = arith.constant 0 : index
    %c0_2 = arith.constant 0 : index
    %1 = vector.load %arg2[%c0_1, %c0_2] : memref<128x32xbf16, #tpu.memory_space<vmem>>, vector<128x32xbf16>
    %cst = arith.constant dense<0.000000e+00> : vector<16x32xf32>
    %2 = tpu.matmul %0, %1, %cst {dimension_numbers = #tpu.dot_dimension_numbers<[1], [0], [0], [1], [0, 0, 1, 1], [], []>} : vector<16x128xbf16>, vector<128x32xbf16>, vector<16x32xf32> -> vector<16x32xf32>
    %c0_3 = arith.constant 0 : index
    %c0_4 = arith.constant 0 : index
    %3 = vector.load %arg3[%c0_3, %c0_4] : memref<1x32xf32, #tpu.memory_space<vmem>>, vector<1x32xf32>
    %4 = vector.broadcast %3 : vector<1x32xf32> to vector<16x32xf32>
    %5 = arith.addf %2, %4 : vector<16x32xf32>
    %6 = arith.truncf %5 : vector<16x32xf32> to vector<16x32xbf16>
    %c0_5 = arith.constant 0 : index
    %c0_6 = arith.constant 0 : index
    %7 = vector.load %arg5[%c0_5, %c0_6] : memref<16x32xbf16, #tpu.memory_space<vmem>>, vector<16x32xbf16>
    tpu.vector_store %arg5[%c0_5, %c0_6], %6 {strides = array<i32>} : memref<16x32xbf16, #tpu.memory_space<vmem>>, vector<16x32xbf16>,
    %c0_7 = arith.constant 0 : index
    %c0_8 = arith.constant 0 : index
    %8 = vector.load %arg4[%c0_7, %c0_8] : memref<64x16xbf16, #tpu.memory_space<vmem>>, vector<64x16xbf16>
    %9 = arith.extf %8 : vector<64x16xbf16> to vector<64x16xf32>
    %cst_9 = arith.constant dense<0.000000e+00> : vector<16xf32>
    %10 = vector.multi_reduction <add>, %9, %cst_9 [0] : vector<64x16xf32> to vector<16xf32>
    %11 = vector.shape_cast %10 : vector<16xf32> to vector<1x16xf32>
    %cst_10 = arith.constant 3.200000e+01 : f32
    %12 = vector.broadcast %cst_10 : f32 to vector<1x16xf32>
    %13 = arith.cmpf ogt, %11, %12 : vector<1x16xf32>
    %14 = arith.extui %13 : vector<1x16xi1> to vector<1x16xi32>
    %c0_11 = arith.constant 0 : index
    %c0_12 = arith.constant 0 : index
    %15 = vector.load %arg6[%c0_11, %c0_12] : memref<1x16xi32, #tpu.memory_space<vmem>>, vector<1x16xi32>
    tpu.vector_store %arg6[%c0_11, %c0_12], %14 {strides = array<i32>} : memref<1x16xi32, #tpu.memory_space<vmem>>, vector<1x16xi32>,
    return
  }
  func.func @transform_0(%arg0: i32) -> (i32, i32) {
    %c0_i32 = arith.constant 0 : i32
    %c0_i32_0 = arith.constant 0 : i32
    return %arg0, %c0_i32 : i32, i32
  }
  func.func @transform_1(%arg0: i32) -> (i32, i32) {
    %c0_i32 = arith.constant 0 : i32
    %c0_i32_0 = arith.constant 0 : i32
    %c0_i32_1 = arith.constant 0 : i32
    return %c0_i32, %c0_i32_0 : i32, i32
  }
  func.func @transform_2(%arg0: i32) -> (i32, i32) {
    %c0_i32 = arith.constant 0 : i32
    %c0_i32_0 = arith.constant 0 : i32
    %c0_i32_1 = arith.constant 0 : i32
    return %c0_i32, %c0_i32_0 : i32, i32
  }
  func.func @transform_3(%arg0: i32) -> (i32, i32) {
    %c0_i32 = arith.constant 0 : i32
    %c0_i32_0 = arith.constant 0 : i32
    return %c0_i32, %arg0 : i32, i32
  }
  func.func @transform_4(%arg0: i32) -> (i32, i32) {
    %c0_i32 = arith.constant 0 : i32
    %c0_i32_0 = arith.constant 0 : i32
    return %arg0, %c0_i32 : i32, i32
  }
  func.func @transform_5(%arg0: i32) -> (i32, i32) {
    %c0_i32 = arith.constant 0 : i32
    %c0_i32_0 = arith.constant 0 : i32
    return %c0_i32, %arg0 : i32, i32
  }
}

</mosaic_0001>

<bundles_post_ra>
// kernel: masked_patch_embed_3d.1
= control target key start
LH: loop header
LB: loop body
LE: loop exit
PB: predicated region body
PF: predicated region fallthrough
CT: control target
= control target key end

     0   :  { %v315_v1 = vmov 0.0   ;;  %vm316_vm0 = vmmov 0   ;;  %s416_s0 = inlined_call_operand.vmem [shape: bf16[16,128], index: 0, kind: input, shape index: {}]   ;;  %s417_s1 = inlined_call_operand.vmem [shape: bf16[128,32], index: 1, kind: input, shape index: {}]   ;;  %s418_s2 = inlined_call_operand.vmem [shape: f32[1,32], index: 2, kind: input, shape index: {}]   ;;  %s419_s3 = inlined_call_operand.vmem [shape: bf16[64,16], index: 3, kind: input, shape index: {}]   ;;  %s420_s4 = inlined_call_operand.hbm [shape: bf16[16,32], index: 4, kind: output, shape index: {0}]   ;;  %s421_s5 = inlined_call_operand.vmem [shape: s32[1,16], index: 5, kind: output, shape index: {1}]  }
   0x1   :  { %v282_v0 = vld [vmem:[%s417_s1] sm:$0xff]   ;;  %256 = vmatprep.subr.bf16.mxu0 %v315_v1  ;;  %v283_v2 = vld [vmem:[%s417_s1 + $0x8] sm:$0xff]   ;;  %272 = vmatprep.mubr.msk.bf16.mxu0 %vm316_vm0, %v315_v1  ;;  %v284_v3 = vld [vmem:[%s417_s1 + $0x10] sm:$0xff]  }
   0x2   :  { %257 = vmatpush3.bf16.msra.mxu0 %v282_v0 }
   0x3   :  { %258 = vmatprep.subr.bf16.mxu0 %v315_v1 }
   0x6   :  { %259 = vmatpush3.bf16.msra.mxu0 %v283_v2 }
   0x7   :  { %260 = vmatprep.subr.bf16.mxu0 %v315_v1 }
   0x8   :  { %11 = vsyncpa [#allocation3], 0  ;;  %v285_v4 = vld [vmem:[%s417_s1 + $0x18] sm:$0xff]   ;;  %v286_v5 = vld [vmem:[%s417_s1 + $0x20] sm:$0xff]   ;;  %vm168_vm1 = vcmask 130048   ;;  %v317_v43 = vmov 0  }
   0x9   :  { %v287_v6 = vld [vmem:[%s417_s1 + $0x28] sm:$0xff]   ;;  %v288_v7 = vld [vmem:[%s417_s1 + $0x30] sm:$0xff]   ;;  %v289_v8 = vld [vmem:[%s417_s1 + $0x38] sm:$0xff]   ;;  %vm192_vm3 = vcmask 122880   ;;  %s318_s20 = smov [#allocation2]   ;;  %vm149_vm4 = vcmask 257024  }
   0xa   :  { %261 = vmatpush3.bf16.msra.mxu0 %v284_v3  ;;  %v290_v9 = vld [vmem:[%s416_s0] sm:$0xff]   ;;  %v244_v13 = vld [vmem:[%s419_s3 + $0x8] sm:$0xff]   ;;  %v245_v20 = vld [vmem:[%s419_s3 + $0x10] sm:$0xff]   ;;  %s199_s21 = sshll.u32 %s318_s20, 4  ;;  %s200_s21 = int_to_ptr.vmem [resolvable:$true] %s199_s21 }
   0xb   :  { %262 = vmatprep.subr.bf16.mxu0 %v315_v1  ;;  %v229_v10 = vld [vmem:[%s419_s3] sm:$0xff]   ;;  %v234_v14 = vunpack.c.l.bf16 %v244_v13  ;;  %v235_v18 = vunpack.c.h.bf16 %v244_v13  ;;  %v238_v22 = vunpack.c.l.bf16 %v245_v20  ;;  %v239_v25 = vunpack.c.h.bf16 %v245_v20  ;;  %v246_v27 = vld [vmem:[%s419_s3 + $0x18] sm:$0xff]   ;;  %s291_s22 = scalar_lea.vmem %s200_s21, 128  ;;  %p296_p1 = scmp.lt.s32.totalorder %s200_s21, %s200_s21 }
   0xc   :  { %v230_v11 = vunpack.c.l.bf16 %v229_v10  ;;  %v231_v12 = vunpack.c.h.bf16 %v229_v10  ;;  %v242_v29 = vunpack.c.l.bf16 %v246_v27  ;;  %v243_v32 = vunpack.c.h.bf16 %v246_v27  ;;  %v214_v45 = vld [vmem:[%s418_s2] ss:$0 sm:$0xff]  ;;  %p292_p0 = scmp.ne.s32.totalorder %s200_s21, %s291_s22  ;;  %p297_p2 = scmp.lt.s32.totalorder %s291_s22, %s291_s22 }
   0xd   :  { %v172_v19 = vsel %vm168_vm1, %v234_v14, 0.0  ;;  %v174_v23 = vsel %vm168_vm1, %v235_v18, 0.0  ;;  %v176_v26 = vsel %vm168_vm1, %v238_v22, 0.0  ;;  %v178_v30 = vsel %vm168_vm1, %v239_v25, 0.0 }
   0xe   :  { %263 = vmatpush3.bf16.msra.mxu0 %v285_v4  ;;  %v169_v15 = vsel %vm168_vm1, %v230_v11, 0.0  ;;  %v170_v16 = vsel %vm168_vm1, %v231_v12, 0.0  ;;  %v180_v33 = vsel %vm168_vm1, %v242_v29, 0.0  ;;  %v182_v35 = vsel %vm168_vm1, %v243_v32, 0.0  ;;  %p298_p3 = por %p297_p2, %p296_p1 }
   0xf   :  { %264 = vmatprep.subr.bf16.mxu0 %v315_v1  ;;  %v171_v17 = vadd.f32 %v170_v16, %v169_v15 }
  0x10   :  { %p299_p4 = pnand %p298_p3, %p292_p0 }
  0x11   :  { %v173_v21 = vadd.f32 %v172_v19, %v171_v17 }
  0x12   :  { %265 = vmatpush3.bf16.msra.mxu0 %v286_v5 }
  0x13   :  { %266 = vmatprep.subr.bf16.mxu0 %v315_v1  ;;  %v175_v24 = vadd.f32 %v174_v23, %v173_v21 }
  0x15   :  { %v177_v28 = vadd.f32 %v176_v26, %v175_v24 }
  0x16   :  { %267 = vmatpush3.bf16.msra.mxu0 %v287_v6 }
  0x17   :  { %268 = vmatprep.subr.bf16.mxu0 %v315_v1  ;;  %v179_v31 = vadd.f32 %v178_v30, %v177_v28 }
  0x19   :  { %v181_v34 = vadd.f32 %v180_v33, %v179_v31 }
  0x1a   :  { %269 = vmatpush3.bf16.msra.mxu0 %v288_v7 }
  0x1b   :  { %270 = vmatprep.subr.bf16.mxu0 %v315_v1  ;;  %v183_v36 = vadd.f32 %v182_v35, %v181_v34 }
  0x1d   :  { %v184_v37 = vrot.slane %v183_v36, 4 }
  0x1e   :  { %271 = vmatpush3.bf16.msra.mxu0 %v289_v8 }
  0x1f   :  { %v185_v38 = vadd.f32 %v184_v37, %v183_v36 }
  0x21   :  { %273 = vmatmul.mubr.bf16.vlgmr.msra.gmra.mrb[0].mxu0 %v290_v9  ;;  %v186_v39 = vrot.slane %v185_v38, 2 }
  0x23   :  { %v187_v40 = vadd.f32 %v186_v39, %v185_v38 }
  0x25   :  { %v188_v41 = vrot.slane %v187_v40, 1 }
  0x27   :  { %v189_v42 = vadd.f32 %v188_v41, %v187_v40 }
  0x29   :  { %vm190_vm2 = vcmp.gt.f32.partialorder %v189_v42, 32.0 }
  0x2a   :  { %v191_v44 = vsel %vm190_vm2, 1, %v317_v43 }
  0x2b   :  { %193 = vst.msk [vmem:[%s421_s5] sm:$0x1] %vm192_vm3, %v191_v44 }
  0xf4   :  { %v134_v46 = vpop.f32.mrb[0].mxu0 }
  0xf5   :  { %v135_v47 = vadd.f32 %v214_v45, %v134_v46  ;;  %v274_v48 = vpop.f32.mrb[1].mxu0 }
  0xf6   :  { %v137_v49 = vpop.f32.mrb[2].mxu0 }
  0xf7   :  { %v226_v50 = vpack.c.bf16 %v135_v47, %v135_v47  ;;  %v138_v51 = vadd.f32 %v214_v45, %v137_v49  ;;  %v275_v52 = vpop.f32.mrb[3].mxu0 }
  0xf9   :  { %150 = vst.msk [vmem:[#allocation2] sm:$0xf] %vm149_vm4, %v226_v50  ;;  %v227_v53 = vpack.c.bf16 %v138_v51, %v138_v51 }
  0xfb   :  { %151 = vst.msk [vmem:[#allocation2 + $0x4] sm:$0xf] %vm149_vm4, %v227_v53 }
  0xfc   :  { %302 = shalt.err (!%p299_p4)
}
  0xfd   :  { %s303_s23 = scalar_lea.hbm %s420_s4, 128 }
  0xfe   :  { %p304_p5 = scmp.ne.s32.totalorder %s420_s4, %s303_s23  ;;  %p307_p6 = scmp.lt.u32.totalorder %s303_s23, %s420_s4 }
 0x100   :  { %p309_p7 = pnand %p307_p6, %p304_p5 }
 0x102   :  { %312 = shalt.err (!%p309_p7)
}
 0x103   :  { %s319_s28 = smov 64   ;;  %s320_s29 = smov 4  }
 0x104   :  { %205 = dma.vmem_to_hbm [thread:$0]  %s200_s21, 128, %s420_s4, [#allocation3], %s319_s28, %s319_s28, %s320_s29  }
 0x105   :  { %313 = dma.done.wait [#allocation3], 128  }
 0x106   :  { %314 = vsyncadd [#allocation3], 4294967168 }
 0x107   :  { %213 = vsyncpa [#allocation3], 1 }

// kernel: masked_patch_embed_3d.1
= control target key start
LH: loop header
LB: loop body
LE: loop exit
PB: predicated region body
PF: predicated region fallthrough
CT: control target
= control target key end

     0   :  { %v315_v1 = vmov 0.0   ;;  %vm316_vm0 = vmmov 0   ;;  %s416_s0 = inlined_call_operand.vmem [shape: bf16[16,128], index: 0, kind: input, shape index: {}]   ;;  %s417_s1 = inlined_call_operand.vmem [shape: bf16[128,32], index: 1, kind: input, shape index: {}]   ;;  %s418_s2 = inlined_call_operand.vmem [shape: f32[1,32], index: 2, kind: input, shape index: {}]   ;;  %s419_s3 = inlined_call_operand.vmem [shape: bf16[64,16], index: 3, kind: input, shape index: {}]   ;;  %s420_s4 = inlined_call_operand.hbm [shape: bf16[16,32], index: 4, kind: output, shape index: {0}]   ;;  %s421_s5 = inlined_call_operand.vmem [shape: s32[1,16], index: 5, kind: output, shape index: {1}]  }
   0x1   :  { %v282_v0 = vld [vmem:[%s417_s1] sm:$0xff]   ;;  %256 = vmatprep.subr.bf16.mxu0 %v315_v1  ;;  %v283_v2 = vld [vmem:[%s417_s1 + $0x8] sm:$0xff]   ;;  %272 = vmatprep.mubr.msk.bf16.mxu0 %vm316_vm0, %v315_v1  ;;  %v284_v3 = vld [vmem:[%s417_s1 + $0x10] sm:$0xff]  }
   0x2   :  { %257 = vmatpush3.bf16.msra.mxu0 %v282_v0 }
   0x3   :  { %258 = vmatprep.subr.bf16.mxu0 %v315_v1 }
   0x6   :  { %259 = vmatpush3.bf16.msra.mxu0 %v283_v2 }
   0x7   :  { %260 = vmatprep.subr.bf16.mxu0 %v315_v1 }
   0x8   :  { %11 = vsyncpa [#allocation3], 0  ;;  %v285_v4 = vld [vmem:[%s417_s1 + $0x18] sm:$0xff]   ;;  %v286_v5 = vld [vmem:[%s417_s1 + $0x20] sm:$0xff]   ;;  %vm168_vm1 = vcmask 130048   ;;  %v317_v43 = vmov 0  }
   0x9   :  { %v287_v6 = vld [vmem:[%s417_s1 + $0x28] sm:$0xff]   ;;  %v288_v7 = vld [vmem:[%s417_s1 + $0x30] sm:$0xff]   ;;  %v289_v8 = vld [vmem:[%s417_s1 + $0x38] sm:$0xff]   ;;  %vm192_vm3 = vcmask 122880   ;;  %s318_s20 = smov [#allocation2]   ;;  %vm149_vm4 = vcmask 257024  }
   0xa   :  { %261 = vmatpush3.bf16.msra.mxu0 %v284_v3  ;;  %v290_v9 = vld [vmem:[%s416_s0] sm:$0xff]   ;;  %v244_v13 = vld [vmem:[%s419_s3 + $0x8] sm:$0xff]   ;;  %v245_v20 = vld [vmem:[%s419_s3 + $0x10] sm:$0xff]   ;;  %s199_s21 = sshll.u32 %s318_s20, 4  ;;  %s200_s21 = int_to_ptr.vmem [resolvable:$true] %s199_s21 }
   0xb   :  { %262 = vmatprep.subr.bf16.mxu0 %v315_v1  ;;  %v229_v10 = vld [vmem:[%s419_s3] sm:$0xff]   ;;  %v234_v14 = vunpack.c.l.bf16 %v244_v13  ;;  %v235_v18 = vunpack.c.h.bf16 %v244_v13  ;;  %v238_v22 = vunpack.c.l.bf16 %v245_v20  ;;  %v239_v25 = vunpack.c.h.bf16 %v245_v20  ;;  %v246_v27 = vld [vmem:[%s419_s3 + $0x18] sm:$0xff]   ;;  %s291_s22 = scalar_lea.vmem %s200_s21, 128  ;;  %p296_p1 = scmp.lt.s32.totalorder %s200_s21, %s200_s21 }
   0xc   :  { %v230_v11 = vunpack.c.l.bf16 %v229_v10  ;;  %v231_v12 = vunpack.c.h.bf16 %v229_v10  ;;  %v242_v29 = vunpack.c.l.bf16 %v246_v27  ;;  %v243_v32 = vunpack.c.h.bf16 %v246_v27  ;;  %v214_v45 = vld [vmem:[%s418_s2] ss:$0 sm:$0xff]  ;;  %p292_p0 = scmp.ne.s32.totalorder %s200_s21, %s291_s22  ;;  %p297_p2 = scmp.lt.s32.totalorder %s291_s22, %s291_s22 }
   0xd   :  { %v172_v19 = vsel %vm168_vm1, %v234_v14, 0.0  ;;  %v174_v23 = vsel %vm168_vm1, %v235_v18, 0.0  ;;  %v176_v26 = vsel %vm168_vm1, %v238_v22, 0.0  ;;  %v178_v30 = vsel %vm168_vm1, %v239_v25, 0.0 }
   0xe   :  { %263 = vmatpush3.bf16.msra.mxu0 %v285_v4  ;;  %v169_v15 = vsel %vm168_vm1, %v230_v11, 0.0  ;;  %v170_v16 = vsel %vm168_vm1, %v231_v12, 0.0  ;;  %v180_v33 = vsel %vm168_vm1, %v242_v29, 0.0  ;;  %v182_v35 = vsel %vm168_vm1, %v243_v32, 0.0  ;;  %p298_p3 = por %p297_p2, %p296_p1 }
   0xf   :  { %264 = vmatprep.subr.bf16.mxu0 %v315_v1  ;;  %v171_v17 = vadd.f32 %v170_v16, %v169_v15 }
  0x10   :  { %p299_p4 = pnand %p298_p3, %p292_p0 }
  0x11   :  { %v173_v21 = vadd.f32 %v172_v19, %v171_v17 }
  0x12   :  { %265 = vmatpush3.bf16.msra.mxu0 %v286_v5 }
  0x13   :  { %266 = vmatprep.subr.bf16.mxu0 %v315_v1  ;;  %v175_v24 = vadd.f32 %v174_v23, %v173_v21 }
  0x15   :  { %v177_v28 = vadd.f32 %v176_v26, %v175_v24 }
  0x16   :  { %267 = vmatpush3.bf16.msra.mxu0 %v287_v6 }
  0x17   :  { %268 = vmatprep.subr.bf16.mxu0 %v315_v1  ;;  %v179_v31 = vadd.f32 %v178_v30, %v177_v28 }
  0x19   :  { %v181_v34 = vadd.f32 %v180_v33, %v179_v31 }
  0x1a   :  { %269 = vmatpush3.bf16.msra.mxu0 %v288_v7 }
  0x1b   :  { %270 = vmatprep.subr.bf16.mxu0 %v315_v1  ;;  %v183_v36 = vadd.f32 %v182_v35, %v181_v34 }
  0x1d   :  { %v184_v37 = vrot.slane %v183_v36, 4 }
  0x1e   :  { %271 = vmatpush3.bf16.msra.mxu0 %v289_v8 }
  0x1f   :  { %v185_v38 = vadd.f32 %v184_v37, %v183_v36 }
  0x21   :  { %273 = vmatmul.mubr.bf16.vlgmr.msra.gmra.mrb[0].mxu0 %v290_v9  ;;  %v186_v39 = vrot.slane %v185_v38, 2 }
  0x23   :  { %v187_v40 = vadd.f32 %v186_v39, %v185_v38 }
  0x25   :  { %v188_v41 = vrot.slane %v187_v40, 1 }
  0x27   :  { %v189_v42 = vadd.f32 %v188_v41, %v187_v40 }
  0x29   :  { %vm190_vm2 = vcmp.gt.f32.partialorder %v189_v42, 32.0 }
  0x2a   :  { %v191_v44 = vsel %vm190_vm2, 1, %v317_v43 }
  0x2b   :  { %193 = vst.msk [vmem:[%s421_s5] sm:$0x1] %vm192_vm3, %v191_v44 }
  0xf4   :  { %v134_v46 = vpop.f32.mrb[0].mxu0 }
  0xf5   :  { %v135_v47 = vadd.f32 %v214_v45, %v134_v46  ;;  %v274_v48 = vpop.f32.mrb[1].mxu0 }
  0xf6   :  { %v137_v49 = vpop.f32.mrb[2].mxu0 }
  0xf7   :  { %v226_v50 = vpack.c.bf16 %v135_v47, %v135_v47  ;;  %v138_v51 = vadd.f32 %v214_v45, %v137_v49  ;;  %v275_v52 = vpop.f32.mrb[3].mxu0 }
  0xf9   :  { %150 = vst.msk [vmem:[#allocation2] sm:$0xf] %vm149_vm4, %v226_v50  ;;  %v227_v53 = vpack.c.bf16 %v138_v51, %v138_v51 }
  0xfb   :  { %151 = vst.msk [vmem:[#allocation2 + $0x4] sm:$0xf] %vm149_vm4, %v227_v53 }
  0xfc   :  { %302 = shalt.err (!%p299_p4)
}
  0xfd   :  { %s303_s23 = scalar_lea.hbm %s420_s4, 128 }
  0xfe   :  { %p304_p5 = scmp.ne.s32.totalorder %s420_s4, %s303_s23  ;;  %p307_p6 = scmp.lt.u32.totalorder %s303_s23, %s420_s4 }
 0x100   :  { %p309_p7 = pnand %p307_p6, %p304_p5 }
 0x102   :  { %312 = shalt.err (!%p309_p7)
}
 0x103   :  { %s319_s28 = smov 64   ;;  %s320_s29 = smov 4  }
 0x104   :  { %205 = dma.vmem_to_hbm [thread:$0]  %s200_s21, 128, %s420_s4, [#allocation3], %s319_s28, %s319_s28, %s320_s29  }
 0x105   :  { %313 = dma.done.wait [#allocation3], 128  }
 0x106   :  { %314 = vsyncadd [#allocation3], 4294967168 }
 0x107   :  { %213 = vsyncpa [#allocation3], 1 }

</bundles_post_ra>
